<compile_context>
chip_gen: v7x
topology: tpu7x:2x2x1
jax: 0.10.0
libtpu: 0.0.40
codegen_flags: <defaults>
</compile_context>

<pallas_src>
import math

import jax
import jax.numpy as jnp
from jax.experimental import pallas as pl
from jax.experimental.pallas import tpu as pltpu


def _round_up(x, m):
    return ((x + m - 1) // m) * m


_VMEM_LIMIT_BYTES = 48 * 1024 * 1024       # safe on v5e/v6e (128 MiB) and v7x (64 MiB)
_RESIDENT_VMEM_BUDGET = 24 * 1024 * 1024   # fast-path working-set budget (headroom kept)


# -----------------------------------------------------------------------------
# Fast path: whole (K, N) weight resident in VMEM, single "parallel" M grid.
# -----------------------------------------------------------------------------
def _linear_resident_kernel(x_ref, w_ref, b_ref, o_ref):
    # x_ref: (tm, K) f32 tile; w_ref: (K, N) bf16 resident weight
    # b_ref: (1, N)  f32 bias;  o_ref: (tm, N) f32 output tile
    x = x_ref[...].astype(jnp.bfloat16)                     # bf16 MXU operands
    acc = jnp.dot(x, w_ref[...], preferred_element_type=jnp.float32)
    acc = acc + b_ref[...].astype(jnp.float32)              # (1, N) broadcast
    o_ref[...] = acc.astype(o_ref.dtype)


def _linear_resident(x, w_bf16, b_f32, tm):
    M, K = x.shape
    _, N = w_bf16.shape
    grid = (pl.cdiv(M, tm),)

    cost = pl.CostEstimate(
        flops=2 * M * N * K,
        transcendentals=0,
        # single pass: x once (f32), weight once (bf16), bias, output once (f32)
        bytes_accessed=4 * M * K + 2 * K * N + 4 * N + 4 * M * N,
    )

    return pl.pallas_call(
        _linear_resident_kernel,
        out_shape=jax.ShapeDtypeStruct((M, N), x.dtype),
        grid_spec=pltpu.PrefetchScalarGridSpec(
            num_scalar_prefetch=0,
            grid=grid,
            in_specs=[
                pl.BlockSpec((tm, K), lambda i: (i, 0)),   # x tile (ragged last block OK)
                pl.BlockSpec((K, N), lambda i: (0, 0)),    # whole weight, resident
                pl.BlockSpec((1, N), lambda i: (0, 0)),    # bias row, resident
            ],
            out_specs=pl.BlockSpec((tm, N), lambda i: (i, 0)),
        ),
        compiler_params=pltpu.CompilerParams(
            dimension_semantics=("parallel",),
            vmem_limit_bytes=_VMEM_LIMIT_BYTES,
        ),
        cost_estimate=cost,
    )(x, w_bf16, b_f32)


# -----------------------------------------------------------------------------
# Fallback path: (M, N, K) tiled grid with f32 VMEM accumulator (large weights).
# -----------------------------------------------------------------------------
def _linear_tiled_kernel(x_ref, w_ref, b_ref, o_ref, acc_ref):
    k = pl.program_id(2)

    @pl.when(k == 0)
    def _init():
        # Fold the bias into the accumulator init (single hoisted broadcast).
        acc_ref[...] = jnp.broadcast_to(
            b_ref[...].astype(jnp.float32), acc_ref.shape)

    acc_ref[...] += jnp.dot(
        x_ref[...].astype(jnp.bfloat16), w_ref[...],
        preferred_element_type=jnp.float32)

    @pl.when(k == pl.num_programs(2) - 1)
    def _finalize():
        o_ref[...] = acc_ref[...].astype(o_ref.dtype)


def _linear_tiled(x, w_bf16, b_f32, *, tm_max=256, tn_max=256, tk_max=512):
    M, K = x.shape
    _, N = w_bf16.shape

    tm = min(tm_max, _round_up(M, 8))
    tn = min(tn_max, _round_up(N, 128))
    tk = min(tk_max, _round_up(K, 128))

    # Only K needs zero padding for correctness (garbage in the contraction dim would
    # corrupt valid rows); ragged M/N edge blocks rely on masked stores instead of pads.
    Kp = _round_up(K, tk)
    xp = x if Kp == K else jnp.pad(x, ((0, 0), (0, Kp - K)))
    wp = w_bf16 if Kp == K else jnp.pad(w_bf16, ((0, Kp - K), (0, 0)))

    grid = (pl.cdiv(M, tm), pl.cdiv(N, tn), Kp // tk)

    cost = pl.CostEstimate(
        flops=2 * M * N * K,
        transcendentals=0,
        bytes_accessed=(4 * M * Kp * grid[1]      # x re-read once per N tile
                        + 2 * Kp * N * grid[0]    # weight re-read once per M tile
                        + 4 * M * N + 4 * N),
    )

    return pl.pallas_call(
        _linear_tiled_kernel,
        out_shape=jax.ShapeDtypeStruct((M, N), x.dtype),
        grid_spec=pltpu.PrefetchScalarGridSpec(
            num_scalar_prefetch=0,
            grid=grid,
            in_specs=[
                pl.BlockSpec((tm, tk), lambda i, j, k: (i, k)),
                pl.BlockSpec((tk, tn), lambda i, j, k: (k, j)),
                pl.BlockSpec((1, tn), lambda i, j, k: (0, j)),
            ],
            out_specs=pl.BlockSpec((tm, tn), lambda i, j, k: (i, j)),
            scratch_shapes=[pltpu.VMEM((tm, tn), jnp.float32)],
        ),
        compiler_params=pltpu.CompilerParams(
            dimension_semantics=("parallel", "parallel", "arbitrary"),
            vmem_limit_bytes=_VMEM_LIMIT_BYTES,
        ),
        cost_estimate=cost,
    )(xp, wp, b_f32)


# -----------------------------------------------------------------------------
# Public wrapper (matches torch: y = x @ W^T + b, with W stored as (K, N) = W^T).
# -----------------------------------------------------------------------------
def linear_pallas(x, weight_t, bias=None, *, tm_max=256):
    """x: (M, K) f32; weight_t: (K, N) bf16 (or f32, cast here); bias: (N,) or None."""
    M, K = x.shape
    K2, N = weight_t.shape
    assert K == K2, "weight_t must be (in_channels, out_channels)"

    if weight_t.dtype != jnp.bfloat16:
        # One-off cast if the caller did not store bf16 at init.
        weight_t = weight_t.astype(jnp.bfloat16)
    if bias is None:
        b = jnp.zeros((1, N), dtype=jnp.float32)
    else:
        b = bias.reshape(1, N).astype(jnp.float32)

    # M tile: MXU/sublane aligned; ensure >= 2 parallel blocks (v7x megacore) when M > 8.
    tm = min(tm_max, _round_up(M, 8))
    if M > 8 and pl.cdiv(M, tm) < 2:
        tm = max(8, _round_up(pl.cdiv(M, 2), 8))

    # Rough fast-path VMEM working set: double-buffered x & out tiles + resident weight.
    resident_bytes = (2 * tm * K * 4) + (K * N * 2) + (2 * tm * N * 4) + (N * 4)
    if resident_bytes <= _RESIDENT_VMEM_BUDGET:
        return _linear_resident(x, weight_t, b, tm)
    return _linear_tiled(x, weight_t, b, tm_max=tm_max)


def init_linear_params(key, in_channels, out_channels, bias=True):
    # torch nn.init.xavier_normal_: std = gain * sqrt(2 / (fan_in + fan_out)), gain = 1.
    # Weight is stored once, in (K, N) = (in, out) layout and bf16, so the forward pass
    # never re-transposes, re-pads, or re-casts it.
    std = math.sqrt(2.0 / (in_channels + out_channels))
    w_t = (std * jax.random.normal(
        key, (in_channels, out_channels), dtype=jnp.float32)).astype(jnp.bfloat16)
    b = jnp.zeros((out_channels,), dtype=jnp.float32) if bias else None
    return w_t, b


if __name__ == "__main__":
    key = jax.random.PRNGKey(0)
    k_w, k_x = jax.random.split(key)

    batch, in_channels, out_channels = 8, 32, 64
    weight_t, bias = init_linear_params(k_w, in_channels, out_channels, bias=True)
    x = jax.random.normal(k_x, (batch, in_channels), dtype=jnp.float32)

    out = jax.block_until_ready(linear_pallas(x, weight_t, bias))

    # Reference (same math as torch nn.Linear forward); bf16 operands -> ~1e-2 tol.
    ref = x @ weight_t.astype(jnp.float32) + bias
    assert out.shape == (batch, out_channels)
    assert jnp.allclose(out, ref, atol=2e-2, rtol=2e-2), "mismatch vs reference"

    # Ragged-M case exercises the masked last block (no per-call padding of x).
    x2 = jax.random.normal(k_x, (10, in_channels), dtype=jnp.float32)
    out2 = jax.block_until_ready(linear_pallas(x2, weight_t, bias))
    ref2 = x2 @ weight_t.astype(jnp.float32) + bias
    assert out2.shape == (10, out_channels)
    assert jnp.allclose(out2, ref2, atol=2e-2, rtol=2e-2), "ragged-M mismatch"

    print("KERNEL_OK")
</pallas_src>

<mosaic_0001>
module attributes {stable_mosaic.version = 11 : i64} {
  func.func @_linear_resident_kernel(%arg0: i32, %arg1: memref<8x32xf32, #tpu.memory_space<vmem>>, %arg2: memref<32x64xbf16, #tpu.memory_space<vmem>>, %arg3: memref<1x64xf32, #tpu.memory_space<vmem>>, %arg4: memref<8x64xf32, #tpu.memory_space<vmem>>) attributes {dimension_semantics = [#tpu.dimension_semantics<parallel>], iteration_bounds = array<i64: 1>, scalar_prefetch = 0 : i64, scratch_operands = 0 : i64, tpu.core_type = #tpu.core_type<tc>, window_params = [{transform_indices = @transform_0, window_bounds = array<i64: 8, 32>}, {pipeline_mode = #tpu.pipeline_mode<synchronous>, transform_indices = @transform_1, window_bounds = array<i64: 32, 64>}, {pipeline_mode = #tpu.pipeline_mode<synchronous>, transform_indices = @transform_2, window_bounds = array<i64: 1, 64>}, {transform_indices = @transform_3, window_bounds = array<i64: 8, 64>}]} {
    %c0 = arith.constant 0 : index
    %c0_0 = arith.constant 0 : index
    %0 = vector.load %arg1[%c0, %c0_0] : memref<8x32xf32, #tpu.memory_space<vmem>>, vector<8x32xf32>
    %1 = arith.truncf %0 : vector<8x32xf32> to vector<8x32xbf16>
    %c0_1 = arith.constant 0 : index
    %c0_2 = arith.constant 0 : index
    %2 = vector.load %arg2[%c0_1, %c0_2] : memref<32x64xbf16, #tpu.memory_space<vmem>>, vector<32x64xbf16>
    %cst = arith.constant dense<0.000000e+00> : vector<8x64xf32>
    %3 = tpu.matmul %1, %2, %cst {dimension_numbers = #tpu.dot_dimension_numbers<[1], [0], [0], [1], [0, 0, 1, 1], [], []>} : vector<8x32xbf16>, vector<32x64xbf16>, vector<8x64xf32> -> vector<8x64xf32>
    %c0_3 = arith.constant 0 : index
    %c0_4 = arith.constant 0 : index
    %4 = vector.load %arg3[%c0_3, %c0_4] : memref<1x64xf32, #tpu.memory_space<vmem>>, vector<1x64xf32>
    %5 = vector.broadcast %4 : vector<1x64xf32> to vector<8x64xf32>
    %6 = arith.addf %3, %5 : vector<8x64xf32>
    %c0_5 = arith.constant 0 : index
    %c0_6 = arith.constant 0 : index
    %7 = vector.load %arg4[%c0_5, %c0_6] : memref<8x64xf32, #tpu.memory_space<vmem>>, vector<8x64xf32>
    tpu.vector_store %arg4[%c0_5, %c0_6], %6 {strides = array<i32>} : memref<8x64xf32, #tpu.memory_space<vmem>>, vector<8x64xf32>,
    return
  }
  func.func @transform_0(%arg0: i32) -> (i32, i32) {
    %c0_i32 = arith.constant 0 : i32
    %c0_i32_0 = arith.constant 0 : i32
    return %arg0, %c0_i32 : i32, i32
  }
  func.func @transform_1(%arg0: i32) -> (i32, i32) {
    %c0_i32 = arith.constant 0 : i32
    %c0_i32_0 = arith.constant 0 : i32
    %c0_i32_1 = arith.constant 0 : i32
    return %c0_i32, %c0_i32_0 : i32, i32
  }
  func.func @transform_2(%arg0: i32) -> (i32, i32) {
    %c0_i32 = arith.constant 0 : i32
    %c0_i32_0 = arith.constant 0 : i32
    %c0_i32_1 = arith.constant 0 : i32
    return %c0_i32, %c0_i32_0 : i32, i32
  }
  func.func @transform_3(%arg0: i32) -> (i32, i32) {
    %c0_i32 = arith.constant 0 : i32
    %c0_i32_0 = arith.constant 0 : i32
    return %arg0, %c0_i32 : i32, i32
  }
}

</mosaic_0001>

<bundles_post_ra>
// kernel: tpu_custom_call.1
= control target key start
LH: loop header
LB: loop body
LE: loop exit
PB: predicated region body
PF: predicated region fallthrough
CT: control target
= control target key end

     0   :  { %8 = vsyncpa [#allocation3], 0  ;;  %s298_s0 = inlined_call_operand.hbm [shape: f32[8,32], index: 0, kind: input, shape index: {}]   ;;  %s299_s1 = inlined_call_operand.hbm [shape: bf16[32,64], index: 1, kind: input, shape index: {}]   ;;  %s300_s2 = inlined_call_operand.vmem [shape: f32[1,64], index: 2, kind: input, shape index: {}]   ;;  %s301_s3 = inlined_call_operand.hbm [shape: f32[8,64], index: 3, kind: output, shape index: {}]  }
   0x1   :  { %9 = vsyncpa [#allocation6], 0 }
   0x2   :  { %10 = vsyncpa [#allocation4], 0  ;;  %s225_s12 = smov [#allocation2]   ;;  %s226_s14 = smov [#allocation5]  }
   0x3   :  { %s17_s13 = sshll.u32 %s225_s12, 4  ;;  %s26_s15 = sshll.u32 %s226_s14, 4  ;;  %s18_s13 = int_to_ptr.vmem [resolvable:$true] %s17_s13  ;;  %s252_s15 = int_to_ptr.vmem [resolvable:$true] %s26_s15 }
   0x4   :  { %s153_s18 = scalar_lea.hbm %s298_s0, 128 }
   0x5   :  { %p154_p0 = scmp.ne.s32.totalorder %s298_s0, %s153_s18  ;;  %p157_p1 = scmp.lt.u32.totalorder %s153_s18, %s298_s0 }
   0x7   :  { %p159_p2 = pnand %p157_p1, %p154_p0 }
   0x9   :  { %162 = shalt.err (!%p159_p2)
}
   0xa   :  { %s163_s23 = scalar_lea.vmem %s18_s13, 128  ;;  %p168_p4 = scmp.lt.s32.totalorder %s18_s13, %s18_s13 }
   0xb   :  { %p164_p3 = scmp.ne.s32.totalorder %s18_s13, %s163_s23  ;;  %p169_p5 = scmp.lt.s32.totalorder %s163_s23, %s163_s23 }
   0xd   :  { %p170_p6 = por %p169_p5, %p168_p4 }
   0xf   :  { %p171_p7 = pnand %p170_p6, %p164_p3 }
  0x11   :  { %174 = shalt.err (!%p171_p7)
}
  0x12   :  { %20 = dma.hbm_to_vmem [thread:$0]  %s298_s0, 128, %s18_s13, [#allocation3]  }
  0x13   :  { %s175_s28 = scalar_lea.hbm %s299_s1, 256 }
  0x14   :  { %p176_p8 = scmp.ne.s32.totalorder %s299_s1, %s175_s28  ;;  %p179_p9 = scmp.lt.u32.totalorder %s175_s28, %s299_s1 }
  0x16   :  { %p181_p10 = pnand %p179_p9, %p176_p8 }
  0x18   :  { %184 = shalt.err (!%p181_p10)
}
  0x19   :  { %s185_s6 = scalar_lea.vmem %s252_s15, 256  ;;  %p190_p12 = scmp.lt.s32.totalorder %s252_s15, %s252_s15 }
  0x1a   :  { %p186_p11 = scmp.ne.s32.totalorder %s252_s15, %s185_s6  ;;  %p191_p13 = scmp.lt.s32.totalorder %s185_s6, %s185_s6 }
  0x1c   :  { %p192_p0 = por %p191_p13, %p190_p12 }
  0x1e   :  { %p193_p1 = pnand %p192_p0, %p186_p11 }
  0x20   :  { %196 = shalt.err (!%p193_p1)
}
  0x21   :  { %s227_s0 = smov 64   ;;  %s228_s7 = smov 4  }
  0x22   :  { %32 = dma.hbm_to_vmem [thread:$0]  %s299_s1, 256, %s252_s15, [#allocation6], %s227_s0, %s227_s0, %s228_s7  }
  0x23   :  { %219 = dma.done.wait [#allocation3], 128  }
  0x24   :  { %220 = vsyncadd [#allocation3], 4294967168 }
  0x25   :  { %221 = dma.done.wait [#allocation6], 256  }
  0x26   :  { %222 = vsyncadd [#allocation6], 4294967040  ;;  %v229_v0 = vmov 0.0   ;;  %vm230_vm0 = vmmov 0   ;;  %v151_v1 = vld [vmem:[#allocation5] sm:$0xff]   ;;  %v152_v2 = vld [vmem:[#allocation5 + $0x8] sm:$0xff]  }
  0x27   :  { %136 = vmatprep.subr.bf16.mxu0 %v229_v0  ;;  %140 = vmatprep.mubr.msk.bf16.mxu0 %vm230_vm0, %v229_v0  ;;  %v42_v3 = vld [vmem:[#allocation2] sm:$0xff]  ;;  %vm67_vm1 = vcmask 261120   ;;  %s231_s1 = smov [#allocation7]   ;;  %vm111_vm2 = vcmask 523264  }
  0x28   :  { %137 = vmatpush3.bf16.msra.mxu0 %v151_v1  ;;  %v43_v4 = vpack.c.bf16 %v42_v3, %v42_v3  ;;  %v129_v5 = vld [vmem:[%s300_s2] ss:$0 sm:$0xff]  ;;  %s119_s12 = sshll.u32 %s231_s1, 4  ;;  %s120_s12 = int_to_ptr.vmem [resolvable:$true] %s119_s12 }
  0x29   :  { %138 = vmatprep.subr.bf16.mxu0 %v229_v0  ;;  %s197_s13 = scalar_lea.vmem %s120_s12, 128  ;;  %p202_p3 = scmp.lt.s32.totalorder %s120_s12, %s120_s12 }
  0x2a   :  { %p198_p2 = scmp.ne.s32.totalorder %s120_s12, %s197_s13  ;;  %p203_p4 = scmp.lt.s32.totalorder %s197_s13, %s197_s13 }
  0x2c   :  { %139 = vmatpush3.bf16.msra.mxu0 %v152_v2  ;;  %p204_p5 = por %p203_p4, %p202_p3 }
  0x2e   :  { %p205_p6 = pnand %p204_p5, %p198_p2 }
  0x2f   :  { %141 = vmatmul.mubr.msk.bf16.vlgmr.msra.gmra.mrb[0].mxu0 %vm67_vm1, %v43_v4 }
 0x102   :  { %v105_v6 = vpop.f32.mrb[0].mxu0 }
 0x103   :  { %v106_v7 = vadd.f32 %v129_v5, %v105_v6  ;;  %v142_v8 = vpop.f32.mrb[1].mxu0 }
 0x104   :  { %v108_v9 = vpop.f32.mrb[2].mxu0 }
 0x105   :  { %v143_v10 = vpop.f32.mrb[3].mxu0  ;;  %112 = vst.msk [vmem:[#allocation7] sm:$0xff] %vm111_vm2, %v106_v7 }
 0x106   :  { %208 = shalt.err (!%p205_p6)
}
 0x107   :  { %s209_s2 = scalar_lea.hbm %s301_s3, 128 }
 0x108   :  { %p210_p7 = scmp.ne.s32.totalorder %s301_s3, %s209_s2  ;;  %p213_p8 = scmp.lt.u32.totalorder %s209_s2, %s301_s3 }
 0x10a   :  { %p215_p9 = pnand %p213_p8, %p210_p7 }
 0x10c   :  { %218 = shalt.err (!%p215_p9)
}
 0x10d   :  { %122 = dma.vmem_to_hbm [thread:$0]  %s120_s12, 128, %s301_s3, [#allocation4]  }
 0x10e   :  { %223 = dma.done.wait [#allocation4], 128  }
 0x10f   :  { %224 = vsyncadd [#allocation4], 4294967168 }
 0x110   :  { %126 = vsyncpa [#allocation3], 1 }
 0x111   :  { %127 = vsyncpa [#allocation6], 1 }
 0x112   :  { %128 = vsyncpa [#allocation4], 1 }

</bundles_post_ra>
